<compile_context>
chip_gen: v5e
topology: v5e:2x2
jax: 0.10.0
libtpu: 0.0.40
codegen_flags: <defaults>
</compile_context>

<pallas_src>
import jax
import jax.numpy as jnp
from jax.experimental import pallas as pl
from jax.experimental.pallas import tpu as pltpu


def _round_up(v, m):
    return ((v + m - 1) // m) * m


def _extractor_kernel(x_ref, w_ref, o_ref):
    # x_ref: (TB, pack*2) packed input rows
    # w_ref: (pack*2, pack*H) block-diagonal packed weight (grid-constant)
    # o_ref: (TB, pack*H) lane-dense packed output
    y = jnp.dot(x_ref[...], w_ref[...], preferred_element_type=jnp.float32)
    o_ref[...] = jnp.maximum(y, 0.0).astype(o_ref.dtype)


def prepare_extractor_params(weight, in_features=2):
    """One-time prep: PyTorch weight (H, in) -> packed block-diagonal (in*P, P*H).

    P = 128 // H when H divides 128 (else P = 1, plain transposed weight).
    out_packed = x_packed @ W_pack reproduces ReLU-input of the Linear layer
    for P consecutive batch rows per 128-lane output row.
    """
    weight = jnp.asarray(weight)
    hidden, k = weight.shape
    assert k == in_features, (weight.shape, in_features)
    pack = 128 // hidden if (hidden <= 128 and 128 % hidden == 0) else 1
    w_t = weight.T  # (in, H)
    if pack == 1:
        return w_t
    w_pack = jnp.zeros((pack * in_features, pack * hidden), w_t.dtype)
    for j in range(pack):  # one-time, tiny
        w_pack = w_pack.at[j * in_features:(j + 1) * in_features,
                           j * hidden:(j + 1) * hidden].set(w_t)
    return w_pack


def extractor_forward(x, w_pack, *, in_features=2, block_rows=4096):
    """ReLU(flatten(x, 1) @ W^T); `w_pack` from `prepare_extractor_params`."""
    b = x.shape[0]
    x2 = x.reshape(b, -1)  # flatten(1)
    assert x2.shape[1] == in_features, (
        f"Extractor expects {in_features} input features, got {x2.shape[1]}")
    pack = w_pack.shape[0] // in_features
    hidden = w_pack.shape[1] // pack

    # Pad batch so the packed-row count bp is a multiple of 8 (sublane
    # alignment) and b divides evenly into packed rows.  Pad rows are zero
    # (relu(0) = 0) and are sliced off below.
    b_pad = _round_up(b, 8 * pack)
    if b_pad != b:
        x2 = jnp.concatenate(
            [x2, jnp.zeros((b_pad - b, in_features), x2.dtype)], axis=0)
    bp = b_pad // pack
    xp = x2.reshape(bp, pack * in_features)  # free row-major reshape

    # Batch tile (packed rows).  Keep >= 2 grid steps when there is enough
    # work so both v7x TensorCores get a share of the "parallel" axis.
    tb = min(block_rows, bp)
    if bp >= 16 and pl.cdiv(bp, tb) < 2:
        tb = _round_up(pl.cdiv(bp, 2), 8)
    grid = (pl.cdiv(bp, tb),)

    out_packed = pl.pallas_call(
        _extractor_kernel,
        out_shape=jax.ShapeDtypeStruct((bp, pack * hidden), x2.dtype),
        grid=grid,
        in_specs=[
            pl.BlockSpec((tb, pack * in_features), lambda i: (i, 0)),
            pl.BlockSpec(w_pack.shape, lambda i: (0, 0)),  # grid-constant
        ],
        out_specs=pl.BlockSpec((tb, pack * hidden), lambda i: (i, 0)),
        compiler_params=pltpu.CompilerParams(
            dimension_semantics=("parallel",)),  # v7x: shard steps over 2 TCs
    )(xp, w_pack)

    out = out_packed.reshape(b_pad, hidden)  # free reshape back
    return out[:b] if b_pad != b else out


if __name__ == "__main__":
    hidden_dim = 32
    batch = 8
    in_features = 2

    key = jax.random.PRNGKey(0)
    kx, kw = jax.random.split(key)

    # Deterministic synthetic parameters (PyTorch weight layout: (out, in)).
    weight = jax.random.normal(kw, (hidden_dim, in_features), jnp.float32) * 0.5
    x = jax.random.normal(kx, (batch, in_features), dtype=jnp.float32)

    w_pack = prepare_extractor_params(weight)        # hoisted packing (once)
    fwd = jax.jit(extractor_forward)

    out = jax.block_until_ready(fwd(x, w_pack))

    # Reference in plain JAX (full-precision contraction).
    ref = jnp.maximum(
        jax.lax.dot_general(x.reshape(batch, -1), weight,
                            (((1,), (1,)), ((), ())),
                            precision=jax.lax.Precision.HIGHEST),
        0.0)
    assert out.shape == (batch, hidden_dim), out.shape
    # Tolerance covers the MXU f32-emulation path (multi-pass bf16); any
    # packing/indexing bug would produce O(1) errors, so this is meaningful.
    assert jnp.allclose(out, ref, atol=1e-3, rtol=1e-3), "mismatch vs reference"

    print("KERNEL_OK")
</pallas_src>

<mosaic_0001>
module attributes {stable_mosaic.version = 11 : i64} {
  func.func @_extractor_kernel(%arg0: i32, %arg1: memref<8x8xf32, #tpu.memory_space<vmem>>, %arg2: memref<8x128xf32, #tpu.memory_space<vmem>>, %arg3: memref<8x128xf32, #tpu.memory_space<vmem>>) attributes {dimension_semantics = [#tpu.dimension_semantics<parallel>], iteration_bounds = array<i64: 1>, scalar_prefetch = 0 : i64, scratch_operands = 0 : i64, tpu.core_type = #tpu.core_type<tc>, window_params = [{transform_indices = @transform_0, window_bounds = array<i64: 8, 8>}, {pipeline_mode = #tpu.pipeline_mode<synchronous>, transform_indices = @transform_1, window_bounds = array<i64: 8, 128>}, {transform_indices = @transform_2, window_bounds = array<i64: 8, 128>}]} {
    %c0 = arith.constant 0 : index
    %c0_0 = arith.constant 0 : index
    %0 = vector.load %arg1[%c0, %c0_0] : memref<8x8xf32, #tpu.memory_space<vmem>>, vector<8x8xf32>
    %c0_1 = arith.constant 0 : index
    %c0_2 = arith.constant 0 : index
    %1 = vector.load %arg2[%c0_1, %c0_2] : memref<8x128xf32, #tpu.memory_space<vmem>>, vector<8x128xf32>
    %cst = arith.constant dense<0.000000e+00> : vector<8x128xf32>
    %2 = tpu.matmul %0, %1, %cst {dimension_numbers = #tpu.dot_dimension_numbers<[1], [0], [0], [1], [0, 0, 1, 1], [], []>} : vector<8x8xf32>, vector<8x128xf32>, vector<8x128xf32> -> vector<8x128xf32>
    %cst_3 = arith.constant 0.000000e+00 : f32
    %3 = vector.broadcast %cst_3 : f32 to vector<8x128xf32>
    %4 = arith.maximumf %2, %3 : vector<8x128xf32>
    %c0_4 = arith.constant 0 : index
    %c0_5 = arith.constant 0 : index
    %5 = vector.load %arg3[%c0_4, %c0_5] : memref<8x128xf32, #tpu.memory_space<vmem>>, vector<8x128xf32>
    tpu.vector_store %arg3[%c0_4, %c0_5], %4 {strides = array<i32>} : memref<8x128xf32, #tpu.memory_space<vmem>>, vector<8x128xf32>,
    return
  }
  func.func @transform_0(%arg0: i32) -> (i32, i32) {
    %c0_i32 = arith.constant 0 : i32
    %c0_i32_0 = arith.constant 0 : i32
    return %arg0, %c0_i32 : i32, i32
  }
  func.func @transform_1(%arg0: i32) -> (i32, i32) {
    %c0_i32 = arith.constant 0 : i32
    %c0_i32_0 = arith.constant 0 : i32
    %c0_i32_1 = arith.constant 0 : i32
    return %c0_i32, %c0_i32_0 : i32, i32
  }
  func.func @transform_2(%arg0: i32) -> (i32, i32) {
    %c0_i32 = arith.constant 0 : i32
    %c0_i32_0 = arith.constant 0 : i32
    return %arg0, %c0_i32 : i32, i32
  }
}

</mosaic_0001>

<bundles_post_ra>
// kernel: extractor_forward.1
= control target key start
LH: loop header
LB: loop body
LE: loop exit
PB: predicated region body
PF: predicated region fallthrough
CT: control target
= control target key end

     0   :  { %vm13_vm0 = vcmask 64512   ;;  %s68_s1 = inlined_call_operand.vmem [shape: f32[8,128], index: 1, kind: input, shape index: {}]   ;;  %s69_s0 = inlined_call_operand.vmem [shape: f32[8,8], index: 0, kind: input, shape index: {}]   ;;  %s70_s2 = inlined_call_operand.vmem [shape: f32[8,128], index: 2, kind: output, shape index: {}]  }
   0x1   :  { %v12_v0 = vld [vmem:[%s68_s1] sm:$0xff] }
   0x2   :  { %v11_v1 = vld [vmem:[%s69_s0] sm:$0xff]  ;;  %32 = vmatpush.msra.mxu0 %v12_v0 }
   0x3   :  { %43 = vmatmul.msk.f32.vlgmr.msra.gmra.mxu0 %vm13_vm0, %v11_v1 }
  0x80   :  { %v34_v2 = vpop.f32.mrf.mxu0 }
  0x81   :  { %v37_v3 = vmax.f32 %v34_v2, 0.0 }
  0x83   :  { %38 = vst [vmem:[%s70_s2] sm:$0xff] %v37_v3 }

</bundles_post_ra>
